<compile_context>
chip_gen: v7x
topology: tpu7x:2x2x1
jax: 0.10.0
libtpu: 0.0.40
codegen_flags: <defaults>
</compile_context>

<pallas_src>
import numpy as np
import jax
import jax.numpy as jnp
from jax import lax
from jax.experimental import pallas as pl
from jax.experimental.pallas import tpu as pltpu

NBINS = 256            # static upper bound on number of histogram bins
COARSE = 16            # coarse bins  (COARSE * FINE == NBINS)
FINE = 16              # fine bins
LANES = 128            # lane width
MM_TILE_R = 2048       # rows per min/max grid step  ((2048,128) f32 = 1 MiB block)
HIST_TILE_R = 1024     # rows per histogram grid step ((1024,128) f32 = 512 KiB)
CHUNK_R = 8            # rows per in-kernel histogram chunk; keeps the two bf16
                       # (8,16,128) one-hots (2 * 32 KiB) register/VMEM resident
NCORES = 2             # leading "parallel" grid axis (v7x megacore; serial on v5e/v6e)
VMEM_LIMIT = 32 * 1024 * 1024

assert COARSE * FINE == NBINS
assert MM_TILE_R % 8 == 0 and HIST_TILE_R % CHUNK_R == 0


def _round_up(a, b):
    return ((a + b - 1) // b) * b


def _cdiv(a, b):
    return (a + b - 1) // b


# --------------------------------------------------------------------------
# pass 1: global min / max
# --------------------------------------------------------------------------
def _make_minmax_kernel(rows, tile_r, n_tiles):
    """Fold each block into an (8,128) running min/max; scalar reduce at the end."""
    n_sub = tile_r // 8
    need_mask = n_tiles * tile_r > rows   # last block partially out of bounds?

    def kernel(x_ref, min_ref, max_ref, mn_sc, mx_sc):
        i = pl.program_id(0)

        @pl.when(i == 0)
        def _():
            mn_sc[...] = jnp.full_like(mn_sc, jnp.inf)
            mx_sc[...] = jnp.full_like(mx_sc, -jnp.inf)

        if need_mask:
            # Hot path: no per-element masking on all but the last tile.
            @pl.when(i < n_tiles - 1)
            def _():
                xr = x_ref[...].reshape(n_sub, 8, LANES)
                mn_sc[...] = jnp.minimum(mn_sc[...], xr.min(axis=0))
                mx_sc[...] = jnp.maximum(mx_sc[...], xr.max(axis=0))

            @pl.when(i == n_tiles - 1)
            def _():
                row = lax.broadcasted_iota(jnp.int32, (tile_r, LANES), 0)
                valid = (i * tile_r + row) < rows
                x = x_ref[...]
                xm = jnp.where(valid, x, jnp.inf).reshape(n_sub, 8, LANES)
                xM = jnp.where(valid, x, -jnp.inf).reshape(n_sub, 8, LANES)
                mn_sc[...] = jnp.minimum(mn_sc[...], xm.min(axis=0))
                mx_sc[...] = jnp.maximum(mx_sc[...], xM.max(axis=0))
        else:
            xr = x_ref[...].reshape(n_sub, 8, LANES)
            mn_sc[...] = jnp.minimum(mn_sc[...], xr.min(axis=0))
            mx_sc[...] = jnp.maximum(mx_sc[...], xr.max(axis=0))

        # Cross-lane/sublane reduction to a scalar only once, at the end.
        @pl.when(i == n_tiles - 1)
        def _():
            min_ref[0, 0] = jnp.min(mn_sc[...])
            max_ref[0, 0] = jnp.max(mx_sc[...])

    return kernel


# --------------------------------------------------------------------------
# pass 2: histogram (coarse x fine factorised one-hot, combined on the MXU)
# --------------------------------------------------------------------------
def _make_hist_kernel(rows, tile_r, steps_per_core):
    n_chunks = tile_r // CHUNK_R
    need_mask = NCORES * steps_per_core * tile_r > rows

    def kernel(stats_ref, x_ref, hist_ref):
        c = pl.program_id(0)   # "parallel" axis (TensorCore on v7x)
        i = pl.program_id(1)   # "arbitrary" reduction axis

        @pl.when(i == 0)
        def _():
            hist_ref[...] = jnp.zeros_like(hist_ref)

        # Hoisted scalar math: one multiply per element in the hot loop.
        mn = stats_ref[0]
        mx = stats_ref[1]
        rng = mx - mn
        nbins_f = jnp.clip(jnp.floor(rng + 1.0), 1.0, float(NBINS))
        scale = nbins_f / jnp.where(rng > 0.0, rng, 1.0)

        # Constants hoisted out of the chunk loop (JAX does not CSE broadcasts).
        sub_iota = lax.broadcasted_iota(jnp.float32, (CHUNK_R, COARSE, LANES), 1)
        if need_mask:
            tile_row0 = (c * steps_per_core + i) * tile_r
            row_iota = lax.broadcasted_iota(jnp.int32, (CHUNK_R, LANES), 0)

        @pl.loop(0, n_chunks)
        def _(k):
            r0 = k * CHUNK_R
            xc = x_ref[pl.ds(pl.multiple_of(r0, CHUNK_R), CHUNK_R), :]
            # Bin index, kept in f32 (exact for small integers).
            b = jnp.clip(jnp.floor((xc - mn) * scale), 0.0, nbins_f - 1.0)
            if need_mask:
                # Rows past the end of the data (Pallas block padding / clamped
                # duplicate blocks) go to a nonexistent coarse bin -> contribute 0.
                valid = (tile_row0 + r0 + row_iota) < rows
                b = jnp.where(valid, b, float(NBINS))
            bc = jnp.floor(b * (1.0 / FINE))     # coarse bin, exact
            bf = b - bc * float(FINE)            # fine bin, exact
            # Small factorised one-hots: 16 compares/element each (not 256).
            co = (bc[:, None, :] == sub_iota).astype(jnp.bfloat16)   # (R,16,128)
            fo = (bf[:, None, :] == sub_iota).astype(jnp.bfloat16)   # (R,16,128)
            # MXU: per-row outer-product accumulation over the 128 lanes.
            part = jnp.einsum("rgl,rfl->rgf", co, fo,
                              preferred_element_type=jnp.float32)     # (R,16,16)
            hist_ref[0] += part.sum(axis=0)

    return kernel


# --------------------------------------------------------------------------
# wrapper
# --------------------------------------------------------------------------
def st_otsu(x):
    """Pallas implementation of STOtsu.forward. Returns (threshold, bad_egg)."""
    xf = x.reshape(-1)
    if xf.dtype != jnp.float32:
        # TODO(synk): keep narrow dtypes (uint8/bf16) in HBM and cast after the
        # DMA inside the kernels to cut HBM read traffic further.
        xf = xf.astype(jnp.float32)
    n = xf.shape[0]

    # Pad only up to the next multiple of 128 lanes (zero for typical image
    # tensors), using a *real* element value so min/max need no correction;
    # the histogram over-count is subtracted in the glue.
    pad = (-n) % LANES
    if pad:
        last_val = xf[-1]
        xf = jnp.pad(xf, (0, pad), mode="edge")
    rows = (n + pad) // LANES
    x2d = xf.reshape(rows, LANES)            # free reshape of contiguous data

    smem_spec = pl.BlockSpec(memory_space=pltpu.MemorySpace.SMEM)

    # ---- pass 1: global min / max ----
    tile_mm = min(MM_TILE_R, _round_up(rows, 8))
    n_tiles = _cdiv(rows, tile_mm)
    min_x, max_x = pl.pallas_call(
        _make_minmax_kernel(rows, tile_mm, n_tiles),
        grid=(n_tiles,),
        in_specs=[pl.BlockSpec((tile_mm, LANES), lambda i: (i, 0))],
        out_specs=[smem_spec, smem_spec],
        out_shape=[jax.ShapeDtypeStruct((1, 1), jnp.float32),
                   jax.ShapeDtypeStruct((1, 1), jnp.float32)],
        scratch_shapes=[pltpu.VMEM((8, LANES), jnp.float32),
                        pltpu.VMEM((8, LANES), jnp.float32)],
        compiler_params=pltpu.CompilerParams(
            dimension_semantics=("arbitrary",),
            vmem_limit_bytes=VMEM_LIMIT),
    )(x2d)
    min_s = min_x[0, 0]
    max_s = max_x[0, 0]
    stats = jnp.stack([min_s, max_s]).astype(jnp.float32)   # (2,) SMEM scalars

    # ---- pass 2: histogram (per-core partials, "parallel" leading axis) ----
    rows_per_core = _cdiv(rows, NCORES)
    tile_h = min(HIST_TILE_R, _round_up(rows_per_core, CHUNK_R))
    spc = _cdiv(rows_per_core, tile_h)        # grid steps per core
    n_blocks = _cdiv(rows, tile_h)            # real blocks along the row dim
    if NCORES * spc > n_blocks:
        # Tiny inputs: clamp so no block is fully out of bounds (the kernel's
        # row mask discards the duplicated rows).
        x_map = lambda c, i: (jnp.minimum(c * spc + i, n_blocks - 1), 0)
    else:
        x_map = lambda c, i: (c * spc + i, 0)

    hist_parts = pl.pallas_call(
        _make_hist_kernel(rows, tile_h, spc),
        grid=(NCORES, spc),
        in_specs=[smem_spec,
                  pl.BlockSpec((tile_h, LANES), x_map)],
        out_specs=pl.BlockSpec((1, COARSE, FINE), lambda c, i: (c, 0, 0)),
        out_shape=jax.ShapeDtypeStruct((NCORES, COARSE, FINE), jnp.float32),
        compiler_params=pltpu.CompilerParams(
            dimension_semantics=("parallel", "arbitrary"),
            vmem_limit_bytes=VMEM_LIMIT),
    )(stats, x2d)
    # bin index = 16 * coarse + fine  ->  row-major reshape of the (16,16) grid.
    hist = jnp.sum(hist_parts, axis=0).reshape(NBINS)

    # ---- correct the histogram for the (rare) lane padding ----
    rng = max_s - min_s
    nbins_f = jnp.clip(jnp.floor(rng + 1.0), 1.0, float(NBINS))
    if pad:
        scale = nbins_f / jnp.where(rng > 0.0, rng, 1.0)
        pad_bin = jnp.clip(jnp.floor((last_val - min_s) * scale),
                           0.0, nbins_f - 1.0).astype(jnp.int32)
        hist = hist.at[pad_bin].add(-float(pad))

    # ---- O(NBINS) threshold selection (plain-JAX glue) ----
    bin_centers = min_s + jnp.arange(NBINS, dtype=jnp.float32)
    hc = hist * bin_centers

    weight1 = jnp.cumsum(hist)
    w2r = jnp.cumsum(hist[::-1])
    weight2 = w2r[::-1]

    # Guard empty bins so no NaN (0/0) can reach argmax.
    mean1 = jnp.where(weight1 > 0.0,
                      jnp.cumsum(hc) / jnp.where(weight1 > 0.0, weight1, 1.0),
                      0.0)
    mean2r = jnp.where(w2r > 0.0,
                       jnp.cumsum(hc[::-1]) / jnp.where(w2r > 0.0, w2r, 1.0),
                       0.0)
    mean2 = mean2r[::-1]

    diff_avg_sq = (mean1[:-1] - mean2[1:]) ** 2
    variance12 = weight1[:-1] * weight2[1:] * diff_avg_sq
    valid = jnp.arange(NBINS - 1, dtype=jnp.float32) < (nbins_f - 1.0)
    variance12 = jnp.where(valid, variance12, -jnp.inf)
    idx = jnp.argmax(variance12)
    threshold = bin_centers[idx]

    bad_egg = (min_s == max_s)
    threshold = jnp.where(bad_egg, min_s, threshold)
    return threshold, bad_egg


def _ref_otsu(x_np):
    """Pure numpy reference following the PyTorch module's semantics."""
    x = np.asarray(x_np, dtype=np.float64).ravel()
    mn, mx = x.min(), x.max()
    if mn == mx:
        return float(mn)
    bins = int(mx - mn + 1)
    centers = np.arange(mn, mx + 1, 1.0)[:bins]
    hist, _ = np.histogram(x, bins=bins, range=(mn, mx))
    hist = hist.astype(np.float64)
    w1 = np.cumsum(hist)
    w2 = np.cumsum(hist[::-1])[::-1]
    hc = hist * centers
    m1 = np.cumsum(hc) / w1
    m2 = np.cumsum(hc[::-1])[::-1] / w2
    var12 = w1[:-1] * w2[1:] * (m1[:-1] - m2[1:]) ** 2
    return float(centers[:-1][int(np.argmax(var12))])


if __name__ == "__main__":
    key = jax.random.PRNGKey(0)
    # integer-valued float image, NCHW (B=2, C=4, H=16, W=16), levels in [0, 180)
    x = jnp.floor(
        jax.random.uniform(key, (2, 4, 16, 16), minval=0.0, maxval=180.0)
    ).astype(jnp.float32)

    threshold, bad_egg = jax.block_until_ready(st_otsu(x))

    ref = _ref_otsu(np.asarray(x))
    assert not bool(bad_egg)
    assert abs(float(threshold) - ref) <= 1e-3, (float(threshold), ref)
    print("KERNEL_OK")
</pallas_src>

<mosaic_0001>
module attributes {stable_mosaic.version = 11 : i64} {
  func.func @kernel(%arg0: i32, %arg1: memref<16x128xf32, #tpu.memory_space<vmem>>, %arg2: memref<1x1xf32, #tpu.memory_space<smem>>, %arg3: memref<1x1xf32, #tpu.memory_space<smem>>, %arg4: memref<8x128xf32, #tpu.memory_space<vmem>>, %arg5: memref<8x128xf32, #tpu.memory_space<vmem>>) attributes {dimension_semantics = [#tpu.dimension_semantics<arbitrary>], iteration_bounds = array<i64: 1>, scalar_prefetch = 0 : i64, scratch_operands = 2 : i64, tpu.core_type = #tpu.core_type<tc>, window_params = [{transform_indices = @transform_0, window_bounds = array<i64: 16, 128>}, {transform_indices = @transform_1, window_bounds = array<i64: 1, 1>}, {transform_indices = @transform_2, window_bounds = array<i64: 1, 1>}]} {
    %c0_i32 = arith.constant 0 : i32
    %0 = arith.cmpi eq, %arg0, %c0_i32 : i32
    %1 = arith.extui %0 : i1 to i32
    %c0_i32_0 = arith.constant 0 : i32
    %2 = arith.cmpi ne, %1, %c0_i32_0 : i32
    scf.if %2 {
      %cst_13 = arith.constant 0x7F800000 : f32
      %16 = vector.broadcast %cst_13 : f32 to vector<8x128xf32>
      %c0_14 = arith.constant 0 : index
      %c0_15 = arith.constant 0 : index
      %17 = vector.load %arg4[%c0_14, %c0_15] : memref<8x128xf32, #tpu.memory_space<vmem>>, vector<8x128xf32>
      tpu.vector_store %arg4[%c0_14, %c0_15], %16 {strides = array<i32>} : memref<8x128xf32, #tpu.memory_space<vmem>>, vector<8x128xf32>,
      %cst_16 = arith.constant 0xFF800000 : f32
      %18 = vector.broadcast %cst_16 : f32 to vector<8x128xf32>
      %c0_17 = arith.constant 0 : index
      %c0_18 = arith.constant 0 : index
      %19 = vector.load %arg5[%c0_17, %c0_18] : memref<8x128xf32, #tpu.memory_space<vmem>>, vector<8x128xf32>
      tpu.vector_store %arg5[%c0_17, %c0_18], %18 {strides = array<i32>} : memref<8x128xf32, #tpu.memory_space<vmem>>, vector<8x128xf32>,
    } else {
    }
    %c0 = arith.constant 0 : index
    %c0_1 = arith.constant 0 : index
    %3 = vector.load %arg1[%c0, %c0_1] : memref<16x128xf32, #tpu.memory_space<vmem>>, vector<16x128xf32>
    %4 = vector.shape_cast %3 : vector<16x128xf32> to vector<2x8x128xf32>
    %c0_2 = arith.constant 0 : index
    %c0_3 = arith.constant 0 : index
    %5 = vector.load %arg4[%c0_2, %c0_3] : memref<8x128xf32, #tpu.memory_space<vmem>>, vector<8x128xf32>
    %cst = arith.constant dense<0x7F800000> : vector<8x128xf32>
    %6 = vector.multi_reduction <minimumf>, %4, %cst [0] : vector<2x8x128xf32> to vector<8x128xf32>
    %7 = arith.minimumf %5, %6 : vector<8x128xf32>
    %c0_4 = arith.constant 0 : index
    %c0_5 = arith.constant 0 : index
    %8 = vector.load %arg4[%c0_4, %c0_5] : memref<8x128xf32, #tpu.memory_space<vmem>>, vector<8x128xf32>
    tpu.vector_store %arg4[%c0_4, %c0_5], %7 {strides = array<i32>} : memref<8x128xf32, #tpu.memory_space<vmem>>, vector<8x128xf32>,
    %c0_6 = arith.constant 0 : index
    %c0_7 = arith.constant 0 : index
    %9 = vector.load %arg5[%c0_6, %c0_7] : memref<8x128xf32, #tpu.memory_space<vmem>>, vector<8x128xf32>
    %cst_8 = arith.constant dense<0xFF800000> : vector<8x128xf32>
    %10 = vector.multi_reduction <maximumf>, %4, %cst_8 [0] : vector<2x8x128xf32> to vector<8x128xf32>
    %11 = arith.maximumf %9, %10 : vector<8x128xf32>
    %c0_9 = arith.constant 0 : index
    %c0_10 = arith.constant 0 : index
    %12 = vector.load %arg5[%c0_9, %c0_10] : memref<8x128xf32, #tpu.memory_space<vmem>>, vector<8x128xf32>
    tpu.vector_store %arg5[%c0_9, %c0_10], %11 {strides = array<i32>} : memref<8x128xf32, #tpu.memory_space<vmem>>, vector<8x128xf32>,
    %c0_i32_11 = arith.constant 0 : i32
    %13 = arith.cmpi eq, %arg0, %c0_i32_11 : i32
    %14 = arith.extui %13 : i1 to i32
    %c0_i32_12 = arith.constant 0 : i32
    %15 = arith.cmpi ne, %14, %c0_i32_12 : i32
    scf.if %15 {
      %c0_13 = arith.constant 0 : index
      %c0_14 = arith.constant 0 : index
      %16 = vector.load %arg4[%c0_13, %c0_14] : memref<8x128xf32, #tpu.memory_space<vmem>>, vector<8x128xf32>
      %17 = vector.shape_cast %16 : vector<8x128xf32> to vector<1x8x128xf32>
      %cst_15 = arith.constant dense<0x7F800000> : vector<1xf32>
      %18 = vector.multi_reduction <minimumf>, %17, %cst_15 [1, 2] : vector<1x8x128xf32> to vector<1xf32>
      %19 = vector.shape_cast %18 : vector<1xf32> to vector<1x1x1xf32>
      %20 = vector.extract %19[0, 0, 0] : f32 from vector<1x1x1xf32>
      %c0_16 = arith.constant 0 : index
      %c0_17 = arith.constant 0 : index
      %21 = memref.load %arg2[%c0_16, %c0_17] : memref<1x1xf32, #tpu.memory_space<smem>>
      memref.store %20, %arg2[%c0_16, %c0_17] : memref<1x1xf32, #tpu.memory_space<smem>>
      %c0_18 = arith.constant 0 : index
      %c0_19 = arith.constant 0 : index
      %22 = vector.load %arg5[%c0_18, %c0_19] : memref<8x128xf32, #tpu.memory_space<vmem>>, vector<8x128xf32>
      %23 = vector.shape_cast %22 : vector<8x128xf32> to vector<1x8x128xf32>
      %cst_20 = arith.constant dense<0xFF800000> : vector<1xf32>
      %24 = vector.multi_reduction <maximumf>, %23, %cst_20 [1, 2] : vector<1x8x128xf32> to vector<1xf32>
      %25 = vector.shape_cast %24 : vector<1xf32> to vector<1x1x1xf32>
      %26 = vector.extract %25[0, 0, 0] : f32 from vector<1x1x1xf32>
      %c0_21 = arith.constant 0 : index
      %c0_22 = arith.constant 0 : index
      %27 = memref.load %arg3[%c0_21, %c0_22] : memref<1x1xf32, #tpu.memory_space<smem>>
      memref.store %26, %arg3[%c0_21, %c0_22] : memref<1x1xf32, #tpu.memory_space<smem>>
    } else {
    }
    return
  }
  func.func @transform_0(%arg0: i32) -> (i32, i32) {
    %c0_i32 = arith.constant 0 : i32
    %c0_i32_0 = arith.constant 0 : i32
    return %arg0, %c0_i32 : i32, i32
  }
  func.func @transform_1(%arg0: i32) -> (i32, i32) {
    %c0_i32 = arith.constant 0 : i32
    %c0_i32_0 = arith.constant 0 : i32
    %c0_i32_1 = arith.constant 0 : i32
    return %c0_i32, %c0_i32_0 : i32, i32
  }
  func.func @transform_2(%arg0: i32) -> (i32, i32) {
    %c0_i32 = arith.constant 0 : i32
    %c0_i32_0 = arith.constant 0 : i32
    %c0_i32_1 = arith.constant 0 : i32
    return %c0_i32, %c0_i32_0 : i32, i32
  }
}

</mosaic_0001>

<bundles_post_ra>
// kernel: tpu_custom_call.1
= control target key start
LH: loop header
LB: loop body
LE: loop exit
PB: predicated region body
PF: predicated region fallthrough
CT: control target
= control target key end

     0   :  { %8 = vsyncpa [#allocation5], 0  ;;  %s208_s0 = inlined_call_operand.hbm [shape: f32[16,128], index: 0, kind: input, shape index: {}]   ;;  %s209_s1 = inlined_call_operand.hbm [shape: f32[1,1], index: 1, kind: output, shape index: {0}]   ;;  %s210_s2 = inlined_call_operand.hbm [shape: f32[1,1], index: 2, kind: output, shape index: {1}]  }
   0x1   :  { %9 = vsyncpa [#allocation6], 0 }
   0x2   :  { %10 = vsyncpa [#allocation9], 0  ;;  %s152_s9 = smov [#allocation4]   ;;  %s104_s13 = scalar_lea.hbm %s208_s0, 256 }
   0x3   :  { %s16_s10 = sshll.u32 %s152_s9, 4  ;;  %p105_p0 = scmp.ne.s32.totalorder %s208_s0, %s104_s13  ;;  %s17_s10 = int_to_ptr.vmem [resolvable:$true] %s16_s10 }
   0x4   :  { %p108_p1 = scmp.lt.u32.totalorder %s104_s13, %s208_s0 }
   0x6   :  { %p110_p2 = pnand %p108_p1, %p105_p0 }
   0x8   :  { %113 = shalt.err (!%p110_p2)
}
   0x9   :  { %s114_s18 = scalar_lea.vmem %s17_s10, 256  ;;  %p119_p4 = scmp.lt.s32.totalorder %s17_s10, %s17_s10 }
   0xa   :  { %p115_p3 = scmp.ne.s32.totalorder %s17_s10, %s114_s18  ;;  %p120_p5 = scmp.lt.s32.totalorder %s114_s18, %s114_s18 }
   0xc   :  { %p121_p6 = por %p120_p5, %p119_p4 }
   0xe   :  { %p122_p7 = pnand %p121_p6, %p115_p3 }
  0x10   :  { %125 = shalt.err (!%p122_p7)
}
  0x11   :  { %s153_s19 = smov 128   ;;  %s154_s20 = smov 8  }
  0x12   :  { %22 = dma.hbm_to_vmem [thread:$0]  %s208_s0, 256, %s17_s10, [#allocation5], %s153_s19, %s153_s19, %s154_s20  }
  0x13   :  { %146 = dma.done.wait [#allocation5], 256  }
  0x14   :  { %147 = vsyncadd [#allocation5], 4294967040  ;;  %v32_v0 = vld [vmem:[#allocation4] sm:$0xff]  ;;  %v33_v1 = vld [vmem:[#allocation4 + $0x8] sm:$0xff]  ;;  %s126_s25 = scalar_lea.hbm %s209_s1, 16 }
  0x15   :  { %v35_v2 = vmin.f32 %v32_v0, %v33_v1  ;;  %v39_v3 = vmax.f32 %v32_v0, %v33_v1  ;;  %p127_p8 = scmp.ne.s32.totalorder %s209_s1, %s126_s25  ;;  %p130_p9 = scmp.lt.u32.totalorder %s126_s25, %s209_s1 }
  0x17   :  { %46 = vmin.xlane.f32.xlu0 %v35_v2  ;;  %p132_p10 = pnand %p130_p9, %p127_p8 }
  0x1b   :  { %58 = vmax.xlane.f32.xlu0 %v39_v3 }
  0xa4   :  { %v47_v4 = vpop.xlane.xlu0 %46 }
  0xa5   :  { %v48_v5 = vrot.slane %v47_v4, 4 }
  0xa7   :  { %v49_v6 = vmin.f32 %v47_v4, %v48_v5 }
  0xa8   :  { %v59_v7 = vpop.xlane.xlu0 %58 }
  0xa9   :  { %v50_v8 = vrot.slane %v49_v6, 2  ;;  %v60_v9 = vrot.slane %v59_v7, 4 }
  0xab   :  { %v61_v10 = vmax.f32 %v59_v7, %v60_v9  ;;  %v51_v11 = vmin.f32 %v49_v6, %v50_v8 }
  0xad   :  { %v62_v12 = vrot.slane %v61_v10, 2  ;;  %v52_v13 = vrot.slane %v51_v11, 1 }
  0xaf   :  { %v63_v14 = vmax.f32 %v61_v10, %v62_v12  ;;  %v53_v15 = vmin.f32 %v51_v11, %v52_v13 }
  0xb1   :  { %95 = vpush %v53_v15  ;;  %v64_v16 = vrot.slane %v63_v14, 1 }
  0xb3   :  { %v65_v17 = vmax.f32 %v63_v14, %v64_v16 }
  0xb5   :  { %97 = vpush %v65_v17 }
  0xe2   :  { %s96_s0 = spop %95 }
  0xe3   :  { %56 = sst [smem:[#allocation7]] %s96_s0 }
  0xe4   :  { %135 = shalt.err (!%p132_p10)
}
  0xe5   :  { %s155_s30 = smov [#allocation7]   ;;  %s136_s8 = scalar_lea.hbm %s210_s2, 16 }
  0xe6   :  { %76 = dma.smem_to_hbm %s155_s30, 16, %s209_s1, [#allocation6]  }
  0xe7   :  { %s98_s5 = spop %97  ;;  %p137_p11 = scmp.ne.s32.totalorder %s210_s2, %s136_s8 }
  0xe8   :  { %68 = sst [smem:[#allocation8]] %s98_s5  ;;  %p140_p12 = scmp.lt.u32.totalorder %s136_s8, %s210_s2 }
  0xea   :  { %p142_p13 = pnand %p140_p12, %p137_p11 }
  0xec   :  { %145 = shalt.err (!%p142_p13)
}
  0xed   :  { %s156_s13 = smov [#allocation8]  }
  0xee   :  { %84 = dma.smem_to_hbm %s156_s13, 16, %s210_s2, [#allocation9]  }
  0xef   :  { %148 = dma.done.wait [#allocation6], 16  }
  0xf0   :  { %149 = vsyncadd [#allocation6], 4294967280 }
  0xf1   :  { %150 = dma.done.wait [#allocation9], 16  }
  0xf2   :  { %151 = vsyncadd [#allocation9], 4294967280 }
  0xf3   :  { %91 = sfence }
  0xf4   :  { %92 = vsyncpa [#allocation5], 1 }
  0xf5   :  { %93 = vsyncpa [#allocation6], 1 }
  0xf6   :  { %94 = vsyncpa [#allocation9], 1 }

</bundles_post_ra>
